<compile_context>
chip_gen: v7x
topology: tpu7x:2x2x1
jax: 0.10.0
libtpu: 0.0.40
codegen_flags: <defaults>
</compile_context>

<pallas_src>
import jax
import jax.numpy as jnp
from jax.experimental import pallas as pl
from jax.experimental.pallas import tpu as pltpu

# Module hyperparameters (EndLayers.__init__ + argsc defaults)
CUTOFF = 0.25       # self.cutoff
VAR_CUTOFF = 0.25   # self.var_cutoff
TEMP = 1.0          # args.T (energy temperature)
TOP2_THRESH = 0.5   # diff.less(0.5)


def _end_layers_kernel(x_ref, o_ref):
    # x_ref: (TB, C) logits block (native dtype); o_ref: (TB, C+1) block.
    x = x_ref[...].astype(jnp.float32)          # in-kernel cast (VPU, cheap)
    _, C = x.shape

    # ---- unbiased variance of |logits| over classes (torch.var, correction=1)
    # Two-pass (mean, then centered squares): numerically safer near the
    # cutoff than sum(a^2)-sum(a)^2/C.  Done first so |x| temps die early.
    inv_c = jnp.float32(1.0 / C)
    inv_cm1 = jnp.float32(1.0 / (C - 1)) if C > 1 else jnp.float32(jnp.inf)
    a = jnp.abs(x)
    mean_a = jnp.sum(a, axis=1, keepdims=True) * inv_c      # (TB, 1)
    d = a - mean_a
    var_a = jnp.sum(d * d, axis=1, keepdims=True) * inv_cm1  # (TB, 1)
    var_mask = var_a < VAR_CUTOFF                             # (TB, 1)

    # ---- softmax over classes (dim=1) ----
    m = jnp.max(x, axis=1, keepdims=True)                    # (TB, 1)
    # second-largest logit (for the top-2 margin); computed on x so the big
    # exp array `e` is only needed for probs/sum.
    second_x = jnp.max(jnp.where(x < m, x, -jnp.inf), axis=1, keepdims=True)
    e = jnp.exp(x - m)                                        # max element == 1.0
    s = jnp.sum(e, axis=1, keepdims=True)                     # (TB, 1)
    inv_s = pl.reciprocal(s, approx=False)                    # exact: feeds output
    probs = e * inv_s                                         # (TB, C)
    # Dominant, lane-dense store: first C columns = softmax in every row.
    o_ref[:, 0:C] = probs.astype(o_ref.dtype)

    # ---- energy score: T * logsumexp(logits / T, dim=1) ----
    # energyScoreCalc appends -T*lse, forward negates it back -> T*lse.
    if TEMP == 1.0:
        lse = m + jnp.log(s)                                  # reuse softmax pieces
    else:  # generic path (recompute on x / T)
        xt = x * jnp.float32(1.0 / TEMP)
        mt = jnp.max(xt, axis=1, keepdims=True)
        lse = jnp.float32(TEMP) * (
            mt + jnp.log(jnp.sum(jnp.exp(xt - mt), axis=1, keepdims=True)))
    energy_flag = (lse <= CUTOFF).astype(jnp.float32)         # (TB, 1)

    # ---- top-2 margin of softmax probs (torch.topk(probs, 2)) ----
    # top1 = 1/s exactly; top2 ~ exp(second_x - m)/s.  When >=2 maxima exist
    # the true margin is 0; our (slight) overestimate stays < 0.5 because
    # s >= 2, so the strict comparison is unchanged.  Only the all-tied row
    # (second_x == -inf) needs the explicit fix-up to margin 0.
    second_e = jnp.exp(second_x - m)                          # (TB, 1) exp (EUP, tiny)
    second_e = jnp.where(second_x == -jnp.inf, jnp.float32(1.0), second_e)
    diff = (jnp.float32(1.0) - second_e) * inv_s              # top1 - top2
    thresh_mask = diff < TOP2_THRESH                          # (TB, 1)

    # ---- combine: rows where (var_mask & thresh_mask) keep the energy flag,
    #      otherwise the row becomes [softmax, 0] (last col -> 0).
    keep = jnp.logical_and(var_mask, thresh_mask)             # (TB, 1)
    last_col = jnp.where(keep, energy_flag, jnp.float32(0.0))
    o_ref[:, C:C + 1] = last_col.astype(o_ref.dtype)          # narrow flag store


def _vmem_capacity_bytes() -> int:
    try:
        return int(pltpu.get_tpu_info().vmem_capacity_bytes)
    except Exception:
        return 64 * 1024 * 1024   # conservative fallback (v7x per-TC physical)


def _choose_block_rows(B: int, C: int, in_itemsize: int, out_itemsize: int) -> int:
    """Batch tile: large (MiB-scale I/O per step), VMEM-safe, sublane-packed."""
    # Sublane packing of the input dtype: f32 -> 8, bf16 -> 16, int8/fp8 -> 32.
    pack = max(8, 32 // max(in_itemsize, 1))
    if B <= pack:
        return B  # block equals full array dim -> always legal

    # VMEM working-set budget: double-buffered in/out blocks plus ~6
    # full-width (TB, C) f32 temporaries materialized by the body.
    vmem = _vmem_capacity_bytes()
    budget = max(4 << 20, min(vmem // 3, 24 << 20))
    per_row = 2 * C * in_itemsize + 2 * (C + 1) * out_itemsize + 6 * C * 4
    cap_rows = budget // max(per_row, 1)

    # Target a few MiB of raw HBM traffic per grid step (amortize ~0.35us/step).
    io_per_row = C * in_itemsize + (C + 1) * out_itemsize
    io_rows = (6 << 20) // max(io_per_row, 1)

    tb = min(B, cap_rows, max(512, io_rows))
    # Keep >= 4 grid steps for large batches so both v7x TensorCores get work.
    if B >= 4 * 512:
        tb = min(tb, max(512, -(-B // 4)))

    tb = max(pack, (tb // pack) * pack)
    return min(tb, B)


def end_layers_forward(logits: jax.Array,
                       block_rows: int | None = None,
                       out_dtype=jnp.float32) -> jax.Array:
    """EndLayers.forward. logits: (B, C) float -> (B, C+1) out_dtype."""
    B, C = logits.shape
    out_dtype = jnp.dtype(out_dtype)
    tb = block_rows if block_rows is not None else _choose_block_rows(
        B, C, logits.dtype.itemsize, out_dtype.itemsize)
    grid = (pl.cdiv(B, tb),)

    # Explicit scoped-VMEM limit: lets v5e/v6e run large tiles, stays inside
    # v7x's smaller physical VMEM.
    vmem_limit = int(min(_vmem_capacity_bytes() // 2, 64 << 20))

    cost = pl.CostEstimate(
        flops=12 * B * C,                        # softmax/var/margin elementwise+reduce
        transcendentals=B * C + 2 * B,           # exp(x-m), log(s), exp(second)
        bytes_accessed=B * C * logits.dtype.itemsize
                       + B * (C + 1) * out_dtype.itemsize,
    )

    return pl.pallas_call(
        _end_layers_kernel,
        out_shape=jax.ShapeDtypeStruct((B, C + 1), out_dtype),
        grid_spec=pltpu.PrefetchScalarGridSpec(
            num_scalar_prefetch=0,
            grid=grid,
            in_specs=[pl.BlockSpec((tb, C), lambda i: (i, 0))],
            out_specs=pl.BlockSpec((tb, C + 1), lambda i: (i, 0)),
        ),
        compiler_params=pltpu.CompilerParams(
            dimension_semantics=("parallel",),   # rows independent -> megacore
            vmem_limit_bytes=vmem_limit,
        ),
        cost_estimate=cost,
    )(logits)


def _reference(logits: jax.Array) -> jax.Array:
    # Pure-JAX replication of the PyTorch forward, for sanity checking.
    x = logits.astype(jnp.float32)
    B, C = x.shape
    probs = jax.nn.softmax(x, axis=1)
    lse = TEMP * jax.scipy.special.logsumexp(x / TEMP, axis=1, keepdims=True)
    energy_flag = (lse <= CUTOFF).astype(jnp.float32)
    ewu = jnp.concatenate([probs, energy_flag], axis=1)
    sm_cols = jnp.concatenate([probs, jnp.zeros((B, 1), jnp.float32)], axis=1)
    top2 = jax.lax.top_k(probs, 2)[0]
    thresh_mask = (top2[:, 0] - top2[:, 1]) < TOP2_THRESH
    var_mask = jnp.var(jnp.abs(x), axis=1, ddof=1) < VAR_CUTOFF
    keep = jnp.logical_and(var_mask, thresh_mask)[:, None]
    return jnp.where(keep, ewu, sm_cols)


if __name__ == "__main__":
    key = jax.random.PRNGKey(0)
    k0, k1 = jax.random.split(key)

    # --- main test: batch=8, num_classes=16, single full block ---
    B, C = 8, 16
    logits = 0.5 * jax.random.normal(k0, (B, C), dtype=jnp.float32)
    # Edge-case rows exercising the tie handling / gating paths:
    logits = logits.at[0].set(jnp.zeros((C,), jnp.float32))       # all tied, flag 0
    logits = logits.at[1, 0].set(3.0)                             # two-way tied max
    logits = logits.at[1, 1].set(3.0)
    logits = logits.at[2, 3].set(8.0)                             # big margin -> gate off
    logits = logits.at[3].set(logits[3] * 5.0)                    # high |x| var -> gate off
    logits = logits.at[4].set(jnp.full((C,), -3.0))               # all tied, flag 1

    out = end_layers_forward(logits)
    jax.block_until_ready(out)
    ref = _reference(logits)
    assert out.shape == (B, C + 1)
    assert jnp.allclose(out, ref, atol=1e-5, rtol=1e-5)

    # --- tiled / pipelined path: B=20, auto tile (16-row blocks, partial last) ---
    B2 = 20
    logits2 = 0.5 * jax.random.normal(k1, (B2, C), dtype=jnp.float32)
    ref2 = _reference(logits2)
    out2a = end_layers_forward(logits2)                # auto block choice
    out2b = end_layers_forward(logits2, block_rows=8)  # explicit small blocks
    jax.block_until_ready((out2a, out2b))
    assert out2a.shape == (B2, C + 1)
    assert jnp.allclose(out2a, ref2, atol=1e-5, rtol=1e-5)
    assert jnp.allclose(out2b, ref2, atol=1e-5, rtol=1e-5)

    # --- native-dtype (bf16) input path: cast happens inside the kernel ---
    logits_bf16 = logits.astype(jnp.bfloat16)
    out_bf = end_layers_forward(logits_bf16)
    jax.block_until_ready(out_bf)
    ref_bf = _reference(logits_bf16.astype(jnp.float32))
    assert jnp.allclose(out_bf, ref_bf, atol=1e-5, rtol=1e-5)

    # --- bf16 output path (halves the dominant HBM write) ---
    out_lo = end_layers_forward(logits, out_dtype=jnp.bfloat16)
    jax.block_until_ready(out_lo)
    assert out_lo.dtype == jnp.bfloat16
    assert jnp.allclose(out_lo.astype(jnp.float32), ref, atol=1e-2, rtol=1e-2)

    print("KERNEL_OK")
</pallas_src>

<mosaic_0001>
module attributes {stable_mosaic.version = 11 : i64} {
  func.func @_end_layers_kernel(%arg0: i32, %arg1: memref<8x16xf32, #tpu.memory_space<vmem>>, %arg2: memref<8x17xf32, #tpu.memory_space<vmem>>) attributes {dimension_semantics = [#tpu.dimension_semantics<parallel>], iteration_bounds = array<i64: 1>, scalar_prefetch = 0 : i64, scratch_operands = 0 : i64, tpu.core_type = #tpu.core_type<tc>, window_params = [{transform_indices = @transform_0, window_bounds = array<i64: 8, 16>}, {transform_indices = @transform_1, window_bounds = array<i64: 8, 17>}]} {
    %c0 = arith.constant 0 : index
    %c0_0 = arith.constant 0 : index
    %0 = vector.load %arg1[%c0, %c0_0] : memref<8x16xf32, #tpu.memory_space<vmem>>, vector<8x16xf32>
    %1 = math.absf %0 : vector<8x16xf32>
    %cst = arith.constant dense<0.000000e+00> : vector<8xf32>
    %2 = vector.multi_reduction <add>, %1, %cst [1] : vector<8x16xf32> to vector<8xf32>
    %3 = vector.shape_cast %2 : vector<8xf32> to vector<8x1xf32>
    %cst_1 = arith.constant 6.250000e-02 : f32
    %4 = vector.broadcast %cst_1 : f32 to vector<8x1xf32>
    %5 = arith.mulf %3, %4 : vector<8x1xf32>
    %6 = vector.broadcast %5 : vector<8x1xf32> to vector<8x16xf32>
    %7 = arith.subf %1, %6 : vector<8x16xf32>
    %8 = arith.mulf %7, %7 : vector<8x16xf32>
    %cst_2 = arith.constant dense<0.000000e+00> : vector<8xf32>
    %9 = vector.multi_reduction <add>, %8, %cst_2 [1] : vector<8x16xf32> to vector<8xf32>
    %10 = vector.shape_cast %9 : vector<8xf32> to vector<8x1xf32>
    %cst_3 = arith.constant 0.0666666701 : f32
    %11 = vector.broadcast %cst_3 : f32 to vector<8x1xf32>
    %12 = arith.mulf %10, %11 : vector<8x1xf32>
    %cst_4 = arith.constant 2.500000e-01 : f32
    %13 = vector.broadcast %cst_4 : f32 to vector<8x1xf32>
    %14 = arith.cmpf olt, %12, %13 : vector<8x1xf32>
    %cst_5 = arith.constant dense<0xFF800000> : vector<8xf32>
    %15 = vector.multi_reduction <maximumf>, %0, %cst_5 [1] : vector<8x16xf32> to vector<8xf32>
    %16 = vector.shape_cast %15 : vector<8xf32> to vector<8x1xf32>
    %17 = vector.broadcast %16 : vector<8x1xf32> to vector<8x16xf32>
    %18 = arith.cmpf olt, %0, %17 : vector<8x16xf32>
    %cst_6 = arith.constant 0xFF800000 : f32
    %19 = vector.broadcast %cst_6 : f32 to vector<8x16xf32>
    %20 = arith.select %18, %0, %19 : vector<8x16xi1>, vector<8x16xf32>
    %cst_7 = arith.constant dense<0xFF800000> : vector<8xf32>
    %21 = vector.multi_reduction <maximumf>, %20, %cst_7 [1] : vector<8x16xf32> to vector<8xf32>
    %22 = vector.shape_cast %21 : vector<8xf32> to vector<8x1xf32>
    %23 = vector.broadcast %16 : vector<8x1xf32> to vector<8x16xf32>
    %24 = arith.subf %0, %23 : vector<8x16xf32>
    %25 = math.exp %24 : vector<8x16xf32>
    %cst_8 = arith.constant dense<0.000000e+00> : vector<8xf32>
    %26 = vector.multi_reduction <add>, %25, %cst_8 [1] : vector<8x16xf32> to vector<8xf32>
    %27 = vector.shape_cast %26 : vector<8xf32> to vector<8x1xf32>
    %28 = tpu.reciprocal %27 : vector<8x1xf32> -> vector<8x1xf32>
    %29 = vector.broadcast %28 : vector<8x1xf32> to vector<8x16xf32>
    %30 = arith.mulf %25, %29 : vector<8x16xf32>
    %c0_9 = arith.constant 0 : index
    %c0_10 = arith.constant 0 : index
    %31 = vector.load %arg2[%c0_9, %c0_10] : memref<8x17xf32, #tpu.memory_space<vmem>>, vector<8x16xf32>
    tpu.vector_store %arg2[%c0_9, %c0_10], %30 {strides = array<i32>} : memref<8x17xf32, #tpu.memory_space<vmem>>, vector<8x16xf32>,
    %32 = math.log %27 : vector<8x1xf32>
    %33 = arith.addf %16, %32 : vector<8x1xf32>
    %cst_11 = arith.constant 2.500000e-01 : f32
    %34 = vector.broadcast %cst_11 : f32 to vector<8x1xf32>
    %35 = arith.cmpf ole, %33, %34 : vector<8x1xf32>
    %36 = arith.extui %35 : vector<8x1xi1> to vector<8x1xi32>
    %37 = arith.sitofp %36 : vector<8x1xi32> to vector<8x1xf32>
    %38 = arith.subf %22, %16 : vector<8x1xf32>
    %39 = math.exp %38 : vector<8x1xf32>
    %cst_12 = arith.constant 0xFF800000 : f32
    %40 = vector.broadcast %cst_12 : f32 to vector<8x1xf32>
    %41 = arith.cmpf oeq, %22, %40 : vector<8x1xf32>
    %cst_13 = arith.constant 1.000000e+00 : f32
    %42 = vector.broadcast %cst_13 : f32 to vector<8x1xf32>
    %43 = arith.select %41, %42, %39 : vector<8x1xi1>, vector<8x1xf32>
    %cst_14 = arith.constant 1.000000e+00 : f32
    %44 = vector.broadcast %cst_14 : f32 to vector<8x1xf32>
    %45 = arith.subf %44, %43 : vector<8x1xf32>
    %46 = arith.mulf %45, %28 : vector<8x1xf32>
    %cst_15 = arith.constant 5.000000e-01 : f32
    %47 = vector.broadcast %cst_15 : f32 to vector<8x1xf32>
    %48 = arith.cmpf olt, %46, %47 : vector<8x1xf32>
    %49 = arith.andi %14, %48 : vector<8x1xi1>
    %cst_16 = arith.constant 0.000000e+00 : f32
    %50 = vector.broadcast %cst_16 : f32 to vector<8x1xf32>
    %51 = arith.select %49, %37, %50 : vector<8x1xi1>, vector<8x1xf32>
    %c0_17 = arith.constant 0 : index
    %c16 = arith.constant 16 : index
    %52 = vector.load %arg2[%c0_17, %c16] : memref<8x17xf32, #tpu.memory_space<vmem>>, vector<8x1xf32>
    tpu.vector_store %arg2[%c0_17, %c16], %51 {strides = array<i32>} : memref<8x17xf32, #tpu.memory_space<vmem>>, vector<8x1xf32>,
    return
  }
  func.func @transform_0(%arg0: i32) -> (i32, i32) {
    %c0_i32 = arith.constant 0 : i32
    %c0_i32_0 = arith.constant 0 : i32
    return %arg0, %c0_i32 : i32, i32
  }
  func.func @transform_1(%arg0: i32) -> (i32, i32) {
    %c0_i32 = arith.constant 0 : i32
    %c0_i32_0 = arith.constant 0 : i32
    return %arg0, %c0_i32 : i32, i32
  }
}

</mosaic_0001>

<bundles_post_ra>
// kernel: tpu_custom_call.1
= control target key start
LH: loop header
LB: loop body
LE: loop exit
PB: predicated region body
PF: predicated region fallthrough
CT: control target
= control target key end

     0   :  { %6 = vsyncpa [#allocation3], 0  ;;  %s188_s0 = inlined_call_operand.hbm [shape: f32[8,16], index: 0, kind: input, shape index: {}]   ;;  %s189_s1 = inlined_call_operand.hbm [shape: f32[8,17], index: 1, kind: output, shape index: {}]  }
   0x1   :  { %7 = vsyncpa [#allocation4], 0  ;;  %s145_s6 = smov [#allocation2]   ;;  %s97_s10 = scalar_lea.hbm %s188_s0, 128 }
   0x2   :  { %s14_s7 = sshll.u32 %s145_s6, 4  ;;  %p98_p0 = scmp.ne.s32.totalorder %s188_s0, %s97_s10  ;;  %s15_s7 = int_to_ptr.vmem [resolvable:$true] %s14_s7 }
   0x3   :  { %p101_p1 = scmp.lt.u32.totalorder %s97_s10, %s188_s0 }
   0x5   :  { %p103_p2 = pnand %p101_p1, %p98_p0 }
   0x7   :  { %106 = shalt.err (!%p103_p2)
}
   0x8   :  { %s107_s15 = scalar_lea.vmem %s15_s7, 128  ;;  %p112_p4 = scmp.lt.s32.totalorder %s15_s7, %s15_s7 }
   0x9   :  { %p108_p3 = scmp.ne.s32.totalorder %s15_s7, %s107_s15  ;;  %p113_p5 = scmp.lt.s32.totalorder %s107_s15, %s107_s15 }
   0xb   :  { %p114_p6 = por %p113_p5, %p112_p4 }
   0xd   :  { %p115_p7 = pnand %p114_p6, %p108_p3 }
   0xf   :  { %118 = shalt.err (!%p115_p7)
}
  0x10   :  { %17 = dma.hbm_to_vmem [thread:$0]  %s188_s0, 128, %s15_s7, [#allocation3]  }
  0x11   :  { %141 = dma.done.wait [#allocation3], 128  }
  0x12   :  { %142 = vsyncadd [#allocation3], 4294967168  ;;  %vm23_vm0 = vcmask 130048   ;;  %v21_v0 = vld [vmem:[#allocation2] sm:$0xff]  ;;  %s146_s0 = smov [#allocation5]   ;;  %vm68_vm6 = vcmask 138368  }
  0x13   :  { %v35_v1 = vsel %vm23_vm0, %v21_v0, -inf  ;;  %v22_v2 = vand.u32 2147483647, %v21_v0  ;;  %s76_s18 = sshll.u32 %s146_s0, 4  ;;  %v147_v31 = vmov 0.0   ;;  %s77_s18 = int_to_ptr.vmem [resolvable:$true] %s76_s18 }
  0x14   :  { %36 = vmax.xlane.f32.xlu0 %v35_v1  ;;  %s119_s19 = scalar_lea.vmem %s77_s18, 128  ;;  %p124_p9 = scmp.lt.s32.totalorder %s77_s18, %s77_s18 }
  0x15   :  { %v24_v3 = vsel %vm23_vm0, %v22_v2, 0.0  ;;  %p120_p8 = scmp.ne.s32.totalorder %s77_s18, %s119_s19  ;;  %p125_p10 = scmp.lt.s32.totalorder %s119_s19, %s119_s19 }
  0x17   :  { %p126_p11 = por %p125_p10, %p124_p9 }
  0x18   :  { %25 = vadd.xlane.f32.xlu0 %v24_v3 }
  0x19   :  { %p127_p12 = pnand %p126_p11, %p120_p8 }
  0xa1   :  { %v37_v4 = vpop.xlane.xlu0 %36 }
  0xa2   :  { %v43_v5 = vsub.f32 %v21_v0, %v37_v4  ;;  %vm38_vm1 = vcmp.lt.f32.partialorder %v21_v0, %v37_v4 }
  0xa3   :  { %v39_v6 = vsel %vm38_vm1, %v21_v0, -inf }
  0xa4   :  { %v44_v7 = vmul.f32 1.442695, %v43_v5  ;;  %v40_v8 = vsel %vm23_vm0, %v39_v6, -inf }
  0xa5   :  { %41 = vmax.xlane.f32.xlu1 %v40_v8  ;;  %v26_v9 = vpop.xlane.xlu0 %25 }
  0xa6   :  { %89 = vpow2.f32 %v44_v7  ;;  %v27_v10 = vmul.f32 0.0625, %v26_v9 }
  0xa8   :  { %v28_v11 = vsub.f32 %v22_v2, %v27_v10 }
  0xaa   :  { %v29_v12 = vmul.f32 %v28_v11, %v28_v11 }
  0xac   :  { %v30_v13 = vsel %vm23_vm0, %v29_v12, 0.0 }
  0xad   :  { %31 = vadd.xlane.f32.xlu0 %v30_v13 }
  0xb0   :  { %v90_v14 = vpop.eup %89 }
  0xb1   :  { %v46_v15 = vsel %vm23_vm0, %v90_v14, 0.0 }
  0xb2   :  { %47 = vadd.xlane.f32.xlu1 %v46_v15 }
 0x132   :  { %v42_v16 = vpop.xlane.xlu1 %41 }
 0x133   :  { %v58_v17 = vsub.f32 %v42_v16, %v37_v4  ;;  %vm61_vm2 = vcmp.eq.f32.partialorder %v42_v16, -inf }
 0x135   :  { %v59_v18 = vmul.f32 1.442695, %v58_v17 }
 0x137   :  { %91 = vpow2.f32 %v59_v18 }
 0x13a   :  { %v32_v22 = vpop.xlane.xlu0 %31 }
 0x13b   :  { %v33_v25 = vmul.f32 0.06666667, %v32_v22 }
 0x13d   :  { %vm34_vm4 = vcmp.lt.f32.partialorder %v33_v25, 0.25 }
 0x13f   :  { %v48_v19 = vpop.xlane.xlu1 %47 }
 0x140   :  { %93 = vrcp.f32 %v48_v19 }
 0x141   :  { %95 = vlog2.f32 %v48_v19  ;;  %v92_v20 = vpop.eup %91 }
 0x142   :  { %v62_v21 = vsel %vm61_vm2, 1.0, %v92_v20 }
 0x143   :  { %v63_v23 = vsub.f32 1.0, %v62_v21 }
 0x14a   :  { %v94_v24 = vpop.eup %93 }
 0x14b   :  { %v96_v26 = vpop.eup %95  ;;  %v64_v27 = vmul.f32 %v94_v24, %v63_v23  ;;  %v50_v28 = vmul.f32 %v94_v24, %v90_v14 }
 0x14c   :  { %v53_v29 = vmul.f32 0.6931472, %v96_v26 }
 0x14d   :  { %51 = vst.msk [vmem:[#allocation5] sm:$0xff] %vm23_vm0, %v50_v28  ;;  %vm65_vm3 = vcmp.lt.f32.partialorder %v64_v27, 0.5 }
 0x14e   :  { %v54_v30 = vadd.f32 %v53_v29, %v37_v4  ;;  %vm66_vm7 = vmand %vm34_vm4, %vm65_vm3 }
 0x150   :  { %vm55_vm5 = vcmp.le.f32.partialorder %v54_v30, 0.25 }
 0x151   :  { %v85_v32 = vsel %vm55_vm5, 1.0, %v147_v31 }
 0x152   :  { %v67_v33 = vsel %vm66_vm7, %v85_v32, 0.0 }
 0x153   :  { %69 = vst.msk [vmem:[#allocation5] sm:$0xff] %vm68_vm6, %v67_v33 }
 0x154   :  { %130 = shalt.err (!%p127_p12)
}
 0x155   :  { %s131_s22 = scalar_lea.hbm %s189_s1, 128 }
 0x156   :  { %p132_p13 = scmp.ne.s32.totalorder %s189_s1, %s131_s22  ;;  %p135_p0 = scmp.lt.u32.totalorder %s131_s22, %s189_s1 }
 0x158   :  { %p137_p1 = pnand %p135_p0, %p132_p13 }
 0x15a   :  { %140 = shalt.err (!%p137_p1)
}
 0x15b   :  { %79 = dma.vmem_to_hbm [thread:$0]  %s77_s18, 128, %s189_s1, [#allocation4]  }
 0x15c   :  { %143 = dma.done.wait [#allocation4], 128  }
 0x15d   :  { %144 = vsyncadd [#allocation4], 4294967168 }
 0x15e   :  { %83 = vsyncpa [#allocation3], 1 }
 0x15f   :  { %84 = vsyncpa [#allocation4], 1 }

</bundles_post_ra>
